<compile_context>
chip_gen: v7x
topology: tpu7x:2x2x1
jax: 0.10.0
libtpu: 0.0.40
codegen_flags: <defaults>
</compile_context>

<pallas_src>
import functools

import jax
import jax.numpy as jnp
from jax import lax
from jax.experimental import pallas as pl
from jax.experimental.pallas import tpu as pltpu

_LANES = 128


def _focal_loss_kernel(x_ref, y_ref, out_ref, acc_ref, *, gamma, alpha,
                       block_rows, steps_per_slice, total, padded):
    c = pl.program_id(0)   # slice / core axis ("parallel")
    i = pl.program_id(1)   # streaming reduction axis ("arbitrary")

    @pl.when(i == 0)
    def _init():
        acc_ref[...] = jnp.zeros_like(acc_ref)

    x = x_ref[...].astype(jnp.float32)
    y = y_ref[...].astype(jnp.float32)

    # Numerically stable log-sigmoid form:
    #   softplus(x) = max(x, 0) + log1p(exp(-|x|))
    #   log(p)      = x - softplus(x)
    #   log(1 - p)  = -softplus(x)
    sp = jnp.maximum(x, 0.0) + jnp.log1p(jnp.exp(-jnp.abs(x)))
    log_p = x - sp
    log_1mp = -sp

    g_int = int(round(gamma))
    if gamma == g_int and 0 <= g_int <= 8:
        # Static integer gamma: repeated multiplication on the VALU (no pow/exp).
        p = jnp.exp(log_p)
        one_m_p = jnp.exp(log_1mp)
        pow_1mp = jnp.ones_like(x)
        pow_p = jnp.ones_like(x)
        for _ in range(g_int):
            pow_1mp = pow_1mp * one_m_p
            pow_p = pow_p * p
    else:
        pow_1mp = jnp.exp(gamma * log_1mp)   # (1 - p) ** gamma
        pow_p = jnp.exp(gamma * log_p)       # p ** gamma

    fl = -y * pow_1mp * log_p - (1.0 - y) * pow_p * log_1mp
    if alpha is not None:
        fl = (alpha * y + (1.0 - alpha) * (1.0 - y)) * fl

    if padded:
        # Zero out contributions from padded elements (static flag: only
        # compiled when the flattened size was actually padded).
        row_ids = lax.broadcasted_iota(jnp.int32, fl.shape, 0)
        lane_ids = lax.broadcasted_iota(jnp.int32, fl.shape, 1)
        base = (c * steps_per_slice + i) * (block_rows * _LANES)
        flat_idx = base + row_ids * _LANES + lane_ids
        fl = jnp.where(flat_idx < total, fl, 0.0)

    # Full-tile vector accumulation: pure VPU adds, no per-step reduce.
    acc_ref[...] += fl

    @pl.when(i == pl.num_programs(1) - 1)
    def _finalize():
        out_ref[...] = acc_ref[...]


def focal_loss(logits, y, *, gamma, alpha=None, block_rows=1024, num_slices=2):
    """Mean focal loss over all elements (matches FocalLoss.forward)."""
    n = logits.size
    rows = pl.cdiv(n, _LANES)

    # Pick a large row tile, shrunk for tiny inputs; keep it a multiple of 8.
    per_slice_rows = pl.cdiv(rows, num_slices)
    br = min(int(block_rows), max(8, ((per_slice_rows + 7) // 8) * 8))
    br = max(8, (br // 8) * 8)

    steps = pl.cdiv(rows, num_slices * br)
    padded_rows = num_slices * steps * br
    padded_n = padded_rows * _LANES
    padded = padded_n != n

    xf = logits.reshape(-1)
    yf = y.reshape(-1)
    if padded:
        xf = jnp.pad(xf, (0, padded_n - n))
        yf = jnp.pad(yf, (0, padded_n - n))
    x2 = xf.reshape(padded_rows, _LANES)   # native dtype; cast happens in-kernel
    y2 = yf.reshape(padded_rows, _LANES)

    kernel = functools.partial(
        _focal_loss_kernel,
        gamma=float(gamma),
        alpha=(None if alpha is None else float(alpha)),
        block_rows=br,
        steps_per_slice=steps,
        total=n,
        padded=padded,
    )

    in_bytes = x2.size * x2.dtype.itemsize + y2.size * y2.dtype.itemsize
    out_bytes = num_slices * br * _LANES * 4
    cost = pl.CostEstimate(
        flops=20 * padded_n,
        transcendentals=4 * padded_n,
        bytes_accessed=in_bytes + out_bytes,
    )

    partial = pl.pallas_call(
        kernel,
        out_shape=jax.ShapeDtypeStruct((num_slices * br, _LANES), jnp.float32),
        grid_spec=pltpu.PrefetchScalarGridSpec(
            num_scalar_prefetch=0,
            grid=(num_slices, steps),
            in_specs=[
                pl.BlockSpec((br, _LANES), lambda c, i: (c * steps + i, 0)),
                pl.BlockSpec((br, _LANES), lambda c, i: (c * steps + i, 0)),
            ],
            out_specs=pl.BlockSpec((br, _LANES), lambda c, i: (c, 0)),
            scratch_shapes=[pltpu.VMEM((br, _LANES), jnp.float32)],
        ),
        compiler_params=pltpu.CompilerParams(
            dimension_semantics=("parallel", "arbitrary")),
        cost_estimate=cost,
    )(x2, y2)

    # Tiny final reduction + mean in the wrapper.
    return jnp.sum(partial) / jnp.float32(n)


def focal_loss_ref(logits, y, *, gamma, alpha=None):
    """Pure-JAX reference mirroring the PyTorch module (naive formulation)."""
    p = jax.nn.sigmoid(logits.astype(jnp.float32))
    yf = y.astype(jnp.float32)
    fl = (-yf * (1.0 - p) ** gamma * jnp.log(p)
          - (1.0 - yf) * p ** gamma * jnp.log(1.0 - p))
    if alpha is not None:
        fl = (alpha * yf + (1.0 - alpha) * (1.0 - yf)) * fl
    return jnp.mean(fl)


if __name__ == "__main__":
    gamma = 2.0
    alpha = 0.25

    key = jax.random.PRNGKey(0)
    k1, k2 = jax.random.split(key)
    # NCHW-shaped logits and binary targets, small demo shapes.
    logits = jax.random.normal(k1, (2, 4, 16, 16), dtype=jnp.float32)
    y = jax.random.bernoulli(k2, p=0.3, shape=(2, 4, 16, 16)).astype(jnp.float32)

    loss = focal_loss(logits, y, gamma=gamma, alpha=alpha)
    loss = jax.block_until_ready(loss)

    ref = focal_loss_ref(logits, y, gamma=gamma, alpha=alpha)
    assert jnp.allclose(loss, ref, rtol=1e-4, atol=1e-6), (loss, ref)

    print("KERNEL_OK")
</pallas_src>

<mosaic_0001>
module attributes {stable_mosaic.version = 11 : i64} {
  func.func @_focal_loss_kernel(%arg0: i32, %arg1: i32, %arg2: memref<8x128xf32, #tpu.memory_space<vmem>>, %arg3: memref<8x128xf32, #tpu.memory_space<vmem>>, %arg4: memref<8x128xf32, #tpu.memory_space<vmem>>, %arg5: memref<8x128xf32, #tpu.memory_space<vmem>>) attributes {dimension_semantics = [#tpu.dimension_semantics<parallel>, #tpu.dimension_semantics<arbitrary>], iteration_bounds = array<i64: 2, 1>, scalar_prefetch = 0 : i64, scratch_operands = 1 : i64, tpu.core_type = #tpu.core_type<tc>, window_params = [{transform_indices = @transform_0, window_bounds = array<i64: 8, 128>}, {transform_indices = @transform_1, window_bounds = array<i64: 8, 128>}, {transform_indices = @transform_2, window_bounds = array<i64: 8, 128>}]} {
    %c0_i32 = arith.constant 0 : i32
    %0 = arith.cmpi eq, %arg1, %c0_i32 : i32
    %1 = arith.extui %0 : i1 to i32
    %c0_i32_0 = arith.constant 0 : i32
    %2 = arith.cmpi ne, %1, %c0_i32_0 : i32
    scf.if %2 {
      %cst_19 = arith.constant 0.000000e+00 : f32
      %47 = vector.broadcast %cst_19 : f32 to vector<8x128xf32>
      %c0_20 = arith.constant 0 : index
      %c0_21 = arith.constant 0 : index
      %48 = vector.load %arg5[%c0_20, %c0_21] : memref<8x128xf32, #tpu.memory_space<vmem>>, vector<8x128xf32>
      tpu.vector_store %arg5[%c0_20, %c0_21], %47 {strides = array<i32>} : memref<8x128xf32, #tpu.memory_space<vmem>>, vector<8x128xf32>,
    } else {
    }
    %c0 = arith.constant 0 : index
    %c0_1 = arith.constant 0 : index
    %3 = vector.load %arg2[%c0, %c0_1] : memref<8x128xf32, #tpu.memory_space<vmem>>, vector<8x128xf32>
    %c0_2 = arith.constant 0 : index
    %c0_3 = arith.constant 0 : index
    %4 = vector.load %arg3[%c0_2, %c0_3] : memref<8x128xf32, #tpu.memory_space<vmem>>, vector<8x128xf32>
    %cst = arith.constant 0.000000e+00 : f32
    %5 = vector.broadcast %cst : f32 to vector<8x128xf32>
    %6 = arith.maximumf %3, %5 : vector<8x128xf32>
    %7 = math.absf %3 : vector<8x128xf32>
    %cst_4 = arith.constant 0.000000e+00 : f32
    %8 = vector.broadcast %cst_4 : f32 to vector<8x128xf32>
    %9 = arith.subf %8, %7 : vector<8x128xf32>
    %10 = math.exp %9 : vector<8x128xf32>
    %11 = math.log1p %10 : vector<8x128xf32>
    %12 = arith.addf %6, %11 : vector<8x128xf32>
    %13 = arith.subf %3, %12 : vector<8x128xf32>
    %cst_5 = arith.constant 0.000000e+00 : f32
    %14 = vector.broadcast %cst_5 : f32 to vector<8x128xf32>
    %15 = arith.subf %14, %12 : vector<8x128xf32>
    %16 = math.exp %13 : vector<8x128xf32>
    %17 = math.exp %15 : vector<8x128xf32>
    %cst_6 = arith.constant 1.000000e+00 : f32
    %18 = vector.broadcast %cst_6 : f32 to vector<8x128xf32>
    %cst_7 = arith.constant 1.000000e+00 : f32
    %19 = vector.broadcast %cst_7 : f32 to vector<8x128xf32>
    %20 = arith.mulf %18, %17 : vector<8x128xf32>
    %21 = arith.mulf %19, %16 : vector<8x128xf32>
    %22 = arith.mulf %20, %17 : vector<8x128xf32>
    %23 = arith.mulf %21, %16 : vector<8x128xf32>
    %cst_8 = arith.constant 0.000000e+00 : f32
    %24 = vector.broadcast %cst_8 : f32 to vector<8x128xf32>
    %25 = arith.subf %24, %4 : vector<8x128xf32>
    %26 = arith.mulf %25, %22 : vector<8x128xf32>
    %27 = arith.mulf %26, %13 : vector<8x128xf32>
    %cst_9 = arith.constant 1.000000e+00 : f32
    %28 = vector.broadcast %cst_9 : f32 to vector<8x128xf32>
    %29 = arith.subf %28, %4 : vector<8x128xf32>
    %30 = arith.mulf %29, %23 : vector<8x128xf32>
    %31 = arith.mulf %30, %15 : vector<8x128xf32>
    %32 = arith.subf %27, %31 : vector<8x128xf32>
    %cst_10 = arith.constant 2.500000e-01 : f32
    %33 = vector.broadcast %cst_10 : f32 to vector<8x128xf32>
    %34 = arith.mulf %33, %4 : vector<8x128xf32>
    %cst_11 = arith.constant 1.000000e+00 : f32
    %35 = vector.broadcast %cst_11 : f32 to vector<8x128xf32>
    %36 = arith.subf %35, %4 : vector<8x128xf32>
    %cst_12 = arith.constant 7.500000e-01 : f32
    %37 = vector.broadcast %cst_12 : f32 to vector<8x128xf32>
    %38 = arith.mulf %37, %36 : vector<8x128xf32>
    %39 = arith.addf %34, %38 : vector<8x128xf32>
    %40 = arith.mulf %39, %32 : vector<8x128xf32>
    %c0_13 = arith.constant 0 : index
    %c0_14 = arith.constant 0 : index
    %41 = vector.load %arg5[%c0_13, %c0_14] : memref<8x128xf32, #tpu.memory_space<vmem>>, vector<8x128xf32>
    %42 = arith.addf %41, %40 : vector<8x128xf32>
    %c0_15 = arith.constant 0 : index
    %c0_16 = arith.constant 0 : index
    %43 = vector.load %arg5[%c0_15, %c0_16] : memref<8x128xf32, #tpu.memory_space<vmem>>, vector<8x128xf32>
    tpu.vector_store %arg5[%c0_15, %c0_16], %42 {strides = array<i32>} : memref<8x128xf32, #tpu.memory_space<vmem>>, vector<8x128xf32>,
    %c0_i32_17 = arith.constant 0 : i32
    %44 = arith.cmpi eq, %arg1, %c0_i32_17 : i32
    %45 = arith.extui %44 : i1 to i32
    %c0_i32_18 = arith.constant 0 : i32
    %46 = arith.cmpi ne, %45, %c0_i32_18 : i32
    scf.if %46 {
      %c0_19 = arith.constant 0 : index
      %c0_20 = arith.constant 0 : index
      %47 = vector.load %arg5[%c0_19, %c0_20] : memref<8x128xf32, #tpu.memory_space<vmem>>, vector<8x128xf32>
      %c0_21 = arith.constant 0 : index
      %c0_22 = arith.constant 0 : index
      %48 = vector.load %arg4[%c0_21, %c0_22] : memref<8x128xf32, #tpu.memory_space<vmem>>, vector<8x128xf32>
      tpu.vector_store %arg4[%c0_21, %c0_22], %47 {strides = array<i32>} : memref<8x128xf32, #tpu.memory_space<vmem>>, vector<8x128xf32>,
    } else {
    }
    return
  }
  func.func @transform_0(%arg0: i32, %arg1: i32) -> (i32, i32) {
    %c1_i32 = arith.constant 1 : i32
    %0 = arith.muli %arg0, %c1_i32 : i32
    %1 = arith.addi %0, %arg1 : i32
    %c0_i32 = arith.constant 0 : i32
    %c0_i32_0 = arith.constant 0 : i32
    return %1, %c0_i32 : i32, i32
  }
  func.func @transform_1(%arg0: i32, %arg1: i32) -> (i32, i32) {
    %c1_i32 = arith.constant 1 : i32
    %0 = arith.muli %arg0, %c1_i32 : i32
    %1 = arith.addi %0, %arg1 : i32
    %c0_i32 = arith.constant 0 : i32
    %c0_i32_0 = arith.constant 0 : i32
    return %1, %c0_i32 : i32, i32
  }
  func.func @transform_2(%arg0: i32, %arg1: i32) -> (i32, i32) {
    %c0_i32 = arith.constant 0 : i32
    %c0_i32_0 = arith.constant 0 : i32
    return %arg0, %c0_i32 : i32, i32
  }
}

</mosaic_0001>

<bundles_post_ra>
// kernel: tpu_custom_call.1
= control target key start
LH: loop header
LB: loop body
LE: loop exit
PB: predicated region body
PF: predicated region fallthrough
CT: control target
= control target key end

     0   :  { %7 = vsyncpa [#allocation4], 0  ;;  %s864_s0 = inlined_call_operand.hbm [shape: f32[16,128], index: 0, kind: input, shape index: {}]   ;;  %s865_s1 = inlined_call_operand.hbm [shape: f32[16,128], index: 1, kind: input, shape index: {}]   ;;  %s866_s2 = inlined_call_operand.hbm [shape: f32[16,128], index: 2, kind: output, shape index: {}]  }
   0x1   :  { %9 = vsyncpa [#allocation4 + $0x1], 0 }
   0x2   :  { %10 = vsyncpa [#allocation7], 0 }
   0x3   :  { %12 = vsyncpa [#allocation7 + $0x1], 0 }
   0x4   :  { %13 = vsyncpa [#allocation5], 0 }
   0x5   :  { %15 = vsyncpa [#allocation5 + $0x1], 0  ;;  %s639_s9 = smov 0   ;;  %s641_s10 = smov 0  }
   0x6   :  { %s643_s11 = smov 0   ;;  %s645_s12 = smov 0  }
   0x7   :  { %s647_s13 = smov 0   ;;  %s649_s14 = smov 0  }
   0x8 LB: > { %s382_s15 = sadd.s32 4294967295, %s619_s14   ;;  %s383_s16 = sadd.s32 4294967294, %s619_s14   ;;  %s619_s14 = sphi %s649_s14, %s21_s14   ;;  %s615_s13 = sphi %s647_s13, %s886_s13   ;;  %s611_s12 = sphi %s645_s12, %s885_s12   ;;  %s607_s11 = sphi %s643_s11, %s884_s11   ;;  %s603_s10 = sphi %s641_s10, %s883_s10   ;;  %s599_s9 = sphi %s639_s9, %s882_s9  }
   0x9   : > { %s33_s17 = sadd.s32 1, %s615_s13  ;;  %s42_s18 = sadd.s32 1, %s607_s11 }
   0xa   : > { %p35_p0 = scmp.ge.s32.totalorder %s33_s17, 2  ;;  %p49_p1 = scmp.ne.s32.totalorder %s607_s11, %s603_s10 }
   0xb   : > { %p50_p2 = scmp.eq.s32.totalorder %s619_s14, 0  ;;  %p55_p3 = scmp.ne.s32.totalorder %s603_s10, %s599_s9 }
   0xc   : > { %s888_s17 = smov (%p35_p0, %s33_s17), 0  ;;  %p56_p5 = scmp.eq.s32.totalorder %s382_s15, 0 }
   0xd   : > { %p680_p4 = por %p50_p2, %p49_p1  ;;  %s39_s20 = ssub.s32 %s615_s13, %s888_s17 }
   0xe   : > { %p107_p6 = scmp.eq.s32.totalorder %s382_s15, 1  ;;  %p40_p7 = scmp.eq.s32.totalorder %s39_s20, 0 }
   0xf   : > { %p686_p8 = por %p56_p5, %p55_p3  ;;  %p113_p10 = scmp.eq.s32.totalorder %s383_s16, 1 }
  0x10   : > { %p690_p9 = por %p107_p6, %p49_p1  ;;  %p415_p13 = scmp.lt.s32.totalorder %s619_s14, 2 }
  0x11   : > { %s870_s21 = scalar_select %p686_p8, 1, 0 }
  0x12   : > { %s871_s22 = scalar_select %p690_p9, 1, 0 }
  0x13   : > { %s695_s23 = scalar_select %p40_p7, %s607_s11, %s42_s18  }
  0x14   : > { %p697_p11 = por %p113_p10, %p55_p3  ;;  %s704_s25 = sand.u32 1, %s607_s11  }
  0x15   : > { %s386_s26 = sshll.u32 %s704_s25, 3  ;;  %s387_s27 = sshll.u32 %s615_s13, 7 }
  0x16   : > { %s872_s24 = scalar_select %p697_p11, 1, 0 }
  0x17   : > { %s713_s30 = scalar_lea.hbm %s864_s0, %s387_s27  ;;  %s137_s3 = scalar_lea.vmem [#allocation3], %s386_s26 }
  0x18   : > { %s145_s4 = sshll.u32 %s137_s3, 4  ;;  %p721_p0 = pnand %p415_p13, %p680_p4  ;;  %s717_s4 = int_to_ptr.vmem [resolvable:$true] %s145_s4 }
  0x19   : > { %s134_s6 = scalar_lea.sflag [#allocation4], %s704_s25  ;;  %s473_s7 = scalar_lea.hbm %s713_s30, 128 }
  0x1a   : > { %p474_p3 = scmp.ne.s32.totalorder %s713_s30, %s473_s7  ;;  %p475_p5 = pneg %p721_p0 }
  0x1b   : > { %s478_s16 = scalar_lea.hbm %s864_s0, 256  ;;  %p479_p4 = scmp.lt.u32.totalorder %s713_s30, %s864_s0 }
  0x1c   : > { %p476_p6 = pnand %p475_p5, %p474_p3  ;;  %p480_p10 = scmp.lt.u32.totalorder %s478_s16, %s473_s7 }
  0x1d   : > { %p482_p12 = scmp.lt.u32.totalorder %s473_s7, %s713_s30 }
  0x1e   : > { %p477_p7 = pneg %p476_p6  ;;  %p481_p13 = por %p480_p10, %p479_p4 }
  0x20   : > { %p483_p1 = por %p482_p12, %p481_p13 }
  0x22   : > { %p484_p2 = pnand %p483_p1, %p477_p7 }
  0x24   : > { %487 = shalt.err (!%p484_p2)
}
  0x25   : > { %s488_s20 = scalar_lea.vmem %s717_s4, 128  ;;  %s621_s28 = smov [#allocation3]  }
  0x26   : > { %p489_p3 = scmp.ne.s32.totalorder %s717_s4, %s488_s20  ;;  %s493_s29 = sshll.u32 %s621_s28, 4  ;;  %s494_s29 = int_to_ptr.vmem [resolvable:$false] %s493_s29 }
  0x27   : > { %s495_s3 = scalar_lea.vmem %s494_s29, 256  ;;  %p496_p9 = scmp.lt.s32.totalorder %s717_s4, %s494_s29 }
  0x28   : > { %p491_p6 = pnand %p489_p3, %p475_p5  ;;  %p497_p4 = scmp.lt.s32.totalorder %s495_s3, %s488_s20 }
  0x2a   : > { %p492_p11 = pneg %p491_p6  ;;  %p498_p10 = por %p497_p4, %p496_p9 }
  0x2c   : > { %p499_p12 = pnand %p498_p10, %p492_p11 }
  0x2e   : > { %502 = shalt.err (!%p499_p12)
}
  0x2f   : > { %407 = dma.hbm_to_vmem [thread:$0]  (!%p721_p0), %s713_s30, 128, %s717_s4, %s134_s6  }
  0x30   : > { %p874_p1 = scmp.lt.s32.totalorder %s619_s14, 3  ;;  %p875_p2 = scmp.ge.s32.totalorder %s619_s14, 1 }
  0x31   : > { %s766_s16 = scalar_lea.hbm %s865_s1, %s387_s27  ;;  %s156_s18 = scalar_lea.vmem [#allocation6], %s386_s26 }
  0x32   : > { %p757_p7 = pnand %p875_p2, %p874_p1  ;;  %s164_s19 = sshll.u32 %s156_s18, 4  ;;  %s165_s19 = int_to_ptr.vmem [resolvable:$true] %s164_s19 }
  0x33   : > { %s153_s30 = scalar_lea.sflag [#allocation7], %s704_s25  ;;  %s503_s4 = scalar_lea.hbm %s766_s16, 128 }
  0x34   : > { %s876_s7 = scalar_select %p757_p7, 1, 0 }
  0x35   : > { %p504_p9 = scmp.ne.s32.totalorder %s766_s16, %s503_s4  ;;  %s508_s27 = scalar_lea.hbm %s865_s1, 256 }
  0x36   : > { %p509_p3 = scmp.lt.u32.totalorder %s766_s16, %s865_s1  ;;  %p510_p6 = scmp.lt.u32.totalorder %s508_s27, %s503_s4 }
  0x37   : > { %p506_p11 = pnand %p504_p9, %p475_p5  ;;  %p512_p10 = scmp.lt.u32.totalorder %s503_s4, %s766_s16 }
  0x38   : > { %p511_p4 = por %p510_p6, %p509_p3 }
  0x39   : > { %p507_p13 = pneg %p506_p11 }
  0x3a   : > { %p513_p12 = por %p512_p10, %p511_p4 }
  0x3c   : > { %p514_p1 = pnand %p513_p12, %p507_p13 }
  0x3e   : > { %517 = shalt.err (!%p514_p1)
}
  0x3f   : > { %s518_s25 = scalar_lea.vmem %s165_s19, 128  ;;  %s622_s26 = smov [#allocation6]  }
  0x40   : > { %p519_p2 = scmp.ne.s32.totalorder %s165_s19, %s518_s25  ;;  %s523_s3 = sshll.u32 %s622_s26, 4  ;;  %s524_s3 = int_to_ptr.vmem [resolvable:$false] %s523_s3 }
  0x41   : > { %s525_s8 = scalar_lea.vmem %s524_s3, 256  ;;  %p526_p8 = scmp.lt.s32.totalorder %s165_s19, %s524_s3 }
  0x42   : > { %p521_p9 = pnand %p519_p2, %p475_p5  ;;  %p527_p7 = scmp.lt.s32.totalorder %s525_s8, %s518_s25 }
  0x44   : > { %p522_p11 = pneg %p521_p9  ;;  %p528_p3 = por %p527_p7, %p526_p8 }
  0x46   : > { %p529_p6 = pnand %p528_p3, %p522_p11 }
  0x48   : > { %532 = shalt.err (!%p529_p6)
}
  0x49   : > { %410 = dma.hbm_to_vmem [thread:$0]  (!%p721_p0), %s766_s16, 128, %s165_s19, %s153_s30  }
  0x4a   : > { %p877_p13 = scmp.ne.s32.totalorder %s876_s7, 0 }
  0x4b   : > { %s793_s15 = sand.u32 (!%p877_p13), 1, %s603_s10   ;;  %p878_p8 = scmp.ne.s32.totalorder (!%p877_p13), %s870_s21, 0 }
  0x4c   : > { %173 = sbr.rel (%p877_p13) target bundleno = 162 (0xa2), region = 28  ;;  %s796_s18 = sshll.u32 (!%p877_p13), %s793_s15, 3 }
  0x4d   : > { %s176_s4 = scalar_lea.sflag (!%p877_p13), [#allocation4], %s793_s15  ;;  %s179_s6 = scalar_lea.vmem (!%p877_p13), [#allocation3], %s796_s18 }
  0x53   : > { %586 = dma.done.wait (%p878_p8), %s176_s4, 128  }
  0x54   : > { %588 = vsyncadd (%p878_p8), %s176_s4, 4294967168  ;;  %s185_s5 = scalar_lea.sflag [#allocation7], %s793_s15  ;;  %s188_s7 = scalar_lea.vmem [#allocation6], %s796_s18 }
  0x55   : > { %590 = dma.done.wait (%p878_p8), %s185_s5, 128  }
  0x56   : > { %592 = vsyncadd (%p878_p8), %s185_s5, 4294967168  ;;  %v221_v0 = vld [vmem:[%s179_s6] sm:$0xff]  ;;  %v222_v19 = vld [vmem:[%s188_s7] sm:$0xff]  ;;  %s213_s21 = scalar_lea.vmem [#allocation8], %s796_s18  ;;  %s395_s19 = sshll.u32 %s611_s12, 7 }
  0x57   : > { %v224_v1 = vand.u32 2147483647, %v221_v0  ;;  %v223_v11 = vmax.f32 %v221_v0, 0.0  ;;  %v249_v20 = vsub.f32 1.0, %v222_v19  ;;  %v246_v22 = vsub.f32 0.0, %v222_v19  ;;  %s279_s16 = sshll.u32 %s213_s21, 4  ;;  %s817_s27 = scalar_lea.hbm %s866_s2, %s395_s19  ;;  %s812_s16 = int_to_ptr.vmem [resolvable:$true] %s279_s16 }
  0x58   : > { %v253_v26 = vmul.f32 0.25, %v222_v19  ;;  %s266_s28 = scalar_lea.sflag [#allocation5], %s793_s15  ;;  %s533_s29 = scalar_lea.vmem %s812_s16, 128 }
  0x59   : > { %v225_v2 = vsub.f32 0.0, %v224_v1  ;;  %v254_v27 = vmul.f32 0.75, %v249_v20  ;;  %p534_p0 = scmp.ne.s32.totalorder %s812_s16, %s533_s29  ;;  %p879_p5 = scmp.ne.s32.totalorder %s871_s22, 0 }
  0x5a   : > { %s623_s12 = smov [#allocation8]  }
  0x5b   : > { %v226_v3 = vmul.f32 1.442695, %v225_v2  ;;  %v255_v32 = vadd.f32 %v254_v27, %v253_v26  ;;  %p535_p7 = pnand %p534_p0, %p879_p5  ;;  %s537_s25 = sshll.u32 %s623_s12, 4  ;;  %s538_s25 = int_to_ptr.vmem [resolvable:$false] %s537_s25 }
  0x5c   : > { %s539_s26 = scalar_lea.vmem %s538_s25, 256  ;;  %p540_p10 = scmp.lt.s32.totalorder %s812_s16, %s538_s25 }
  0x5d   : > { %465 = vpow2.f32 %v226_v3  ;;  %p536_p4 = pneg %p535_p7  ;;  %p541_p12 = scmp.lt.s32.totalorder %s539_s26, %s533_s29 }
  0x5f   : > { %p542_p1 = por %p541_p12, %p540_p10 }
  0x61   : > { %p543_p2 = pnand %p542_p1, %p536_p4 }
  0x67   : > { %v466_v4 = vpop.eup %465 }
  0x68   : > { %v228_v5 = vadd.f32 1.0, %v466_v4  ;;  %v231_v6 = vmul.f32 -0.5, %v466_v4  ;;  %v234_v8 = vand.u32 2147483647, %v466_v4 }
  0x6a   : > { %467 = vlog2.f32 %v228_v5  ;;  %v232_v7 = vadd.f32 1.0, %v231_v6  ;;  %vm235_vm0 = vcmp.lt.f32.partialorder %v234_v8, 0.0004427343 }
  0x6c   : > { %v233_v9 = vmul.f32 %v466_v4, %v232_v7 }
  0x74   : > { %v468_v10 = vpop.eup %467 }
  0x75   : > { %v230_v12 = vmul.f32 0.6931472, %v468_v10 }
  0x77   : > { %v236_v13 = vsel %vm235_vm0, %v233_v9, %v230_v12 }
  0x78   : > { %v237_v14 = vadd.f32 %v236_v13, %v223_v11 }
  0x7a   : > { %v238_v15 = vsub.f32 %v221_v0, %v237_v14  ;;  %v239_v16 = vsub.f32 0.0, %v237_v14 }
  0x7c   : > { %v240_v17 = vmul.f32 1.442695, %v238_v15  ;;  %v242_v18 = vmul.f32 1.442695, %v239_v16 }
  0x7e   : > { %469 = vpow2.f32 %v240_v17 }
  0x7f   : > { %471 = vpow2.f32 %v242_v18 }
  0x88   : > { %v470_v21 = vpop.eup %469 }
  0x89   : > { %v472_v23 = vpop.eup %471  ;;  %v245_v24 = vmul.f32 %v470_v21, %v470_v21 }
  0x8a   : > { %v244_v25 = vmul.f32 %v472_v23, %v472_v23 }
  0x8b   : > { %v250_v28 = vmul.f32 %v249_v20, %v245_v24 }
  0x8c   : > { %v247_v29 = vmul.f32 %v246_v22, %v244_v25 }
  0x8d   : > { %v251_v30 = vmul.f32 %v250_v28, %v239_v16 }
  0x8e   : > { %v248_v31 = vmul.f32 %v247_v29, %v238_v15 }
  0x90   : > { %v252_v33 = vsub.f32 %v248_v31, %v251_v30 }
  0x92   : > { %v256_v34 = vmul.f32 %v255_v32, %v252_v33 }
  0x94   : > { %264 = vst [vmem:[%s213_s21] sm:$0xff] %v256_v34 }
  0x95   : > { %546 = shalt.err (!%p543_p2)
}
  0x96   : > { %s547_s3 = scalar_lea.hbm %s817_s27, 128  ;;  %s551_s18 = scalar_lea.hbm %s866_s2, 256 }
  0x97   : > { %p548_p9 = scmp.ne.s32.totalorder %s817_s27, %s547_s3  ;;  %p552_p6 = scmp.lt.u32.totalorder %s817_s27, %s866_s2 }
  0x98   : > { %p553_p13 = scmp.lt.u32.totalorder %s551_s18, %s547_s3  ;;  %p555_p0 = scmp.lt.u32.totalorder %s547_s3, %s817_s27 }
  0x99   : > { %p549_p11 = pnand %p548_p9, %p879_p5 }
  0x9a   : > { %p554_p8 = por %p553_p13, %p552_p6 }
  0x9b   : > { %p550_p3 = pneg %p549_p11 }
  0x9c   : > { %p556_p7 = por %p555_p0, %p554_p8 }
  0x9e   : > { %p557_p4 = pnand %p556_p7, %p550_p3 }
  0xa0   : > { %560 = shalt.err (!%p557_p4)
}
  0xa1   : > { %402 = dma.vmem_to_hbm [thread:$0]  (%p879_p5), %s812_s16, 128, %s817_s27, %s266_s28  }
  0xa2 PF: > { %s291_s5 = sand.u32 1, %s599_s9   ;;  %p880_p10 = scmp.ne.s32.totalorder %s872_s24, 0 }
  0xa3   : > { %p881_p12 = scmp.ge.s32.totalorder %s619_s14, 2  ;;  %s292_s7 = scalar_lea.sflag [#allocation5], %s291_s5 }
  0xa5   : > { %p412_p1 = pnand %p881_p12, %p880_p10 }
  0xa7   : > { %594 = dma.done.wait (!%p412_p1), %s292_s7, 128  }
  0xa8   : > { %596 = vsyncadd (!%p412_p1), %s292_s7, 4294967168  ;;  %s21_s14 = sadd.s32 1, %s619_s14   ;;  %s882_s9 = smov %s603_s10 }
  0xa9   : > { %p18_p2 = scmp.ge.s32.totalorder %s21_s14, 4   ;;  %s883_s10 = smov %s607_s11 }
  0xaa   : > { %s884_s11 = smov %s695_s23  ;;  %s885_s12 = smov %s615_s13 }
  0xab   : > { %s886_s13 = smov %s888_s17  ;;  %20 = sbr.rel (!%p18_p2) target bundleno = 8 (0x8), region = 94 }
  0xb2   :  { %297 = vsyncpa [#allocation4], 1 }
  0xb3   :  { %299 = vsyncpa [#allocation4 + $0x1], 1 }
  0xb4   :  { %300 = vsyncpa [#allocation7], 1 }
  0xb5   :  { %302 = vsyncpa [#allocation7 + $0x1], 1 }
  0xb6   :  { %303 = vsyncpa [#allocation5], 1 }
  0xb7   :  { %305 = vsyncpa [#allocation5 + $0x1], 1 }

</bundles_post_ra>
